<compile_context>
chip_gen: v6e
topology: v6e:2x2x1
jax: 0.10.0
libtpu: 0.0.40
codegen_flags: <defaults>
</compile_context>

<pallas_src>
import math

import jax
import jax.numpy as jnp
from jax.experimental import pallas as pl
from jax.experimental.pallas import tpu as pltpu

N_NEURALS = 64
N_HIDDEN_LAYERS = 3   # nn.Linear(n_neurals, n_neurals) repeated 3 times
LANE = 128            # TPU lane width -> lane-dense output block
SUBLANE = 8


def _round_up(x, m):
    return (x + m - 1) // m * m


def _dqn_kernel(x_ref,
                w0_ref, b0_ref,
                wh_ref, bh_ref,
                wl_ref, bl_ref,
                out_ref):
    """One batch tile of the DQN forward (all weights resident in VMEM)."""
    # layer 0: obs -> 64, relu  (bf16 MXU operands, f32 accumulation)
    h = jnp.dot(x_ref[...].astype(jnp.bfloat16), w0_ref[...],
                preferred_element_type=jnp.float32) + b0_ref[...]
    h = jnp.maximum(h, 0.0)

    # hidden layers: 64 -> 64, relu (statically unrolled over the stacked weights)
    for li in range(N_HIDDEN_LAYERS):
        h = jnp.dot(h.astype(jnp.bfloat16), wh_ref[li],
                    preferred_element_type=jnp.float32) + bh_ref[li]
        h = jnp.maximum(h, 0.0)

    # last layer: 64 -> 128 (n_actions zero-padded to a full lane), no relu.
    # f32 accumulation, single cast to the (bf16) output dtype at the store.
    out_ref[...] = (jnp.dot(h.astype(jnp.bfloat16), wl_ref[...],
                            preferred_element_type=jnp.float32)
                    + bl_ref[...]).astype(out_ref.dtype)


def dqn_forward_padded(x, params, *, tile_b=2048, out_dtype=jnp.bfloat16):
    """Fused DQN forward.

    Returns the lane-padded Q-value block of shape (b_pad, round_up(n_actions, 128))
    in `out_dtype` (bf16 by default). Padded action columns are exactly 0.0, so
    slice to [:, :n_actions] before any argmax over actions.
    """
    B, n_obs = x.shape
    n_actions = params[-1][0].shape[1]
    n_out_pad = _round_up(n_actions, LANE)

    # ---- batch tiling ------------------------------------------------------
    b_al = _round_up(B, SUBLANE)
    tile_b = _round_up(max(SUBLANE, min(tile_b, b_al)), SUBLANE)
    if b_al > SUBLANE:
        # Keep >= 2 grid steps whenever possible so the "parallel" batch axis
        # can shard across v7x's two TensorCores (no-op on single-TC v5e/v6e).
        tile_b = min(tile_b, _round_up((b_al + 1) // 2, SUBLANE))
    b_pad = _round_up(b_al, tile_b)
    if b_pad != B:
        x = jnp.pad(x, ((0, b_pad - B), (0, 0)))

    # ---- parameter packing (bf16 weights, f32 biases, resident in VMEM) -----
    w0, b0 = params[0]
    hidden = params[1:1 + N_HIDDEN_LAYERS]
    wl, bl = params[-1]

    w0 = w0.astype(jnp.bfloat16)                                   # (n_obs, 64)
    b0 = b0.reshape(1, -1).astype(jnp.float32)                     # (1, 64)
    wh = jnp.stack([w.astype(jnp.bfloat16) for (w, _) in hidden])  # (3, 64, 64)
    bh = jnp.stack([b.reshape(1, -1).astype(jnp.float32)
                    for (_, b) in hidden])                         # (3, 1, 64)
    wl = jnp.pad(wl, ((0, 0), (0, n_out_pad - n_actions))).astype(jnp.bfloat16)
    bl = jnp.pad(bl.reshape(1, -1),
                 ((0, 0), (0, n_out_pad - n_actions))).astype(jnp.float32)

    grid = (b_pad // tile_b,)

    def resident(a):
        # Constant block index across the batch grid -> DMA'd once, stays resident.
        return pl.BlockSpec(a.shape, lambda i, _nd=a.ndim: (0,) * _nd)

    in_specs = [pl.BlockSpec((tile_b, n_obs), lambda i: (i, 0))]
    in_specs += [resident(a) for a in (w0, b0, wh, bh, wl, bl)]
    out_spec = pl.BlockSpec((tile_b, n_out_pad), lambda i: (i, 0))

    flops = 2 * b_pad * (n_obs * N_NEURALS
                         + N_HIDDEN_LAYERS * N_NEURALS * N_NEURALS
                         + N_NEURALS * n_out_pad)
    flat = (x, w0, b0, wh, bh, wl, bl)
    bytes_accessed = int(sum(a.size * a.dtype.itemsize for a in flat)
                         + b_pad * n_out_pad * jnp.dtype(out_dtype).itemsize)

    return pl.pallas_call(
        _dqn_kernel,
        out_shape=jax.ShapeDtypeStruct((b_pad, n_out_pad), out_dtype),
        grid=grid,
        in_specs=in_specs,
        out_specs=out_spec,
        compiler_params=pltpu.CompilerParams(
            dimension_semantics=("parallel",)),
        cost_estimate=pl.CostEstimate(
            flops=flops, transcendentals=0, bytes_accessed=bytes_accessed),
    )(*flat)


def dqn_forward(x, params, *, tile_b=2048, out_dtype=jnp.bfloat16):
    """Drop-in forward: (B, n_obs) f32 -> (B, n_actions) Q-values (out_dtype).

    For hot training loops prefer `dqn_forward_padded` and fuse the action
    selection / Q(s,a) gather on the padded block to avoid this slice pass.
    """
    B = x.shape[0]
    n_actions = params[-1][0].shape[1]
    out = dqn_forward_padded(x, params, tile_b=tile_b, out_dtype=out_dtype)
    return out[:B, :n_actions]


def init_dqn_params(key, n_observations, n_actions):
    """Deterministic init mimicking nn.Linear's default U(-1/sqrt(fan_in), 1/sqrt(fan_in))."""
    dims = [n_observations] + [N_NEURALS] * (1 + N_HIDDEN_LAYERS) + [n_actions]
    params = []
    for i in range(len(dims) - 1):
        fan_in, fan_out = dims[i], dims[i + 1]
        key, kw, kb = jax.random.split(key, 3)
        bound = 1.0 / math.sqrt(fan_in)
        w = jax.random.uniform(kw, (fan_in, fan_out), jnp.float32, -bound, bound)
        b = jax.random.uniform(kb, (1, fan_out), jnp.float32, -bound, bound)
        params.append((w, b))
    return params


def dqn_reference(x, params, out_dtype=jnp.bfloat16):
    """Plain-JAX reference matching the kernel's numerics (bf16 dots, f32 acc, bf16 store)."""
    h = x
    for (w, b) in params[:-1]:
        h = jnp.dot(h.astype(jnp.bfloat16), w.astype(jnp.bfloat16),
                    preferred_element_type=jnp.float32) + b
        h = jnp.maximum(h, 0.0)
    w, b = params[-1]
    out = jnp.dot(h.astype(jnp.bfloat16), w.astype(jnp.bfloat16),
                  preferred_element_type=jnp.float32) + b
    return out.astype(out_dtype)


if __name__ == "__main__":
    key = jax.random.PRNGKey(0)

    batch = 2
    n_observations = 8   # len(state) for the synthetic TrafficSim env
    n_actions = 4        # env.action_space.n for the synthetic env

    key, kx, kp = jax.random.split(key, 3)
    x = jax.random.normal(kx, (batch, n_observations), jnp.float32)
    params = init_dqn_params(kp, n_observations, n_actions)

    out = dqn_forward(x, params)
    out = jax.block_until_ready(out)

    ref = dqn_reference(x, params)
    assert out.shape == (batch, n_actions)
    assert jnp.allclose(out.astype(jnp.float32), ref.astype(jnp.float32),
                        atol=1e-2, rtol=1e-2), \
        "Pallas output mismatch vs reference"

    print("KERNEL_OK")
</pallas_src>

<mosaic_0001>
module attributes {stable_mosaic.version = 11 : i64} {
  func.func @_dqn_kernel(%arg0: i32, %arg1: memref<8x8xf32, #tpu.memory_space<vmem>>, %arg2: memref<8x64xbf16, #tpu.memory_space<vmem>>, %arg3: memref<1x64xf32, #tpu.memory_space<vmem>>, %arg4: memref<3x64x64xbf16, #tpu.memory_space<vmem>>, %arg5: memref<3x1x64xf32, #tpu.memory_space<vmem>>, %arg6: memref<64x128xbf16, #tpu.memory_space<vmem>>, %arg7: memref<1x128xf32, #tpu.memory_space<vmem>>, %arg8: memref<8x128xbf16, #tpu.memory_space<vmem>>) attributes {dimension_semantics = [#tpu.dimension_semantics<parallel>], iteration_bounds = array<i64: 1>, scalar_prefetch = 0 : i64, scratch_operands = 0 : i64, tpu.core_type = #tpu.core_type<tc>, window_params = [{transform_indices = @transform_0, window_bounds = array<i64: 8, 8>}, {pipeline_mode = #tpu.pipeline_mode<synchronous>, transform_indices = @transform_1, window_bounds = array<i64: 8, 64>}, {pipeline_mode = #tpu.pipeline_mode<synchronous>, transform_indices = @transform_2, window_bounds = array<i64: 1, 64>}, {pipeline_mode = #tpu.pipeline_mode<synchronous>, transform_indices = @transform_3, window_bounds = array<i64: 3, 64, 64>}, {pipeline_mode = #tpu.pipeline_mode<synchronous>, transform_indices = @transform_4, window_bounds = array<i64: 3, 1, 64>}, {pipeline_mode = #tpu.pipeline_mode<synchronous>, transform_indices = @transform_5, window_bounds = array<i64: 64, 128>}, {pipeline_mode = #tpu.pipeline_mode<synchronous>, transform_indices = @transform_6, window_bounds = array<i64: 1, 128>}, {transform_indices = @transform_7, window_bounds = array<i64: 8, 128>}]} {
    %c0 = arith.constant 0 : index
    %c0_0 = arith.constant 0 : index
    %0 = vector.load %arg1[%c0, %c0_0] : memref<8x8xf32, #tpu.memory_space<vmem>>, vector<8x8xf32>
    %1 = arith.truncf %0 : vector<8x8xf32> to vector<8x8xbf16>
    %c0_1 = arith.constant 0 : index
    %c0_2 = arith.constant 0 : index
    %2 = vector.load %arg2[%c0_1, %c0_2] : memref<8x64xbf16, #tpu.memory_space<vmem>>, vector<8x64xbf16>
    %cst = arith.constant dense<0.000000e+00> : vector<8x64xf32>
    %3 = tpu.matmul %1, %2, %cst {dimension_numbers = #tpu.dot_dimension_numbers<[1], [0], [0], [1], [0, 0, 1, 1], [], []>} : vector<8x8xbf16>, vector<8x64xbf16>, vector<8x64xf32> -> vector<8x64xf32>
    %c0_3 = arith.constant 0 : index
    %c0_4 = arith.constant 0 : index
    %4 = vector.load %arg3[%c0_3, %c0_4] : memref<1x64xf32, #tpu.memory_space<vmem>>, vector<1x64xf32>
    %5 = vector.broadcast %4 : vector<1x64xf32> to vector<8x64xf32>
    %6 = arith.addf %3, %5 : vector<8x64xf32>
    %cst_5 = arith.constant 0.000000e+00 : f32
    %7 = vector.broadcast %cst_5 : f32 to vector<8x64xf32>
    %8 = arith.maximumf %6, %7 : vector<8x64xf32>
    %9 = arith.truncf %8 : vector<8x64xf32> to vector<8x64xbf16>
    %c0_6 = arith.constant 0 : index
    %c0_7 = arith.constant 0 : index
    %c0_8 = arith.constant 0 : index
    %10 = vector.load %arg4[%c0_6, %c0_7, %c0_8] : memref<3x64x64xbf16, #tpu.memory_space<vmem>>, vector<1x64x64xbf16>
    %11 = vector.shape_cast %10 : vector<1x64x64xbf16> to vector<64x64xbf16>
    %cst_9 = arith.constant dense<0.000000e+00> : vector<8x64xf32>
    %12 = tpu.matmul %9, %11, %cst_9 {dimension_numbers = #tpu.dot_dimension_numbers<[1], [0], [0], [1], [0, 0, 1, 1], [], []>} : vector<8x64xbf16>, vector<64x64xbf16>, vector<8x64xf32> -> vector<8x64xf32>
    %c0_10 = arith.constant 0 : index
    %c0_11 = arith.constant 0 : index
    %c0_12 = arith.constant 0 : index
    %13 = vector.load %arg5[%c0_10, %c0_11, %c0_12] : memref<3x1x64xf32, #tpu.memory_space<vmem>>, vector<1x1x64xf32>
    %14 = vector.shape_cast %13 : vector<1x1x64xf32> to vector<1x64xf32>
    %15 = vector.broadcast %14 : vector<1x64xf32> to vector<8x64xf32>
    %16 = arith.addf %12, %15 : vector<8x64xf32>
    %cst_13 = arith.constant 0.000000e+00 : f32
    %17 = vector.broadcast %cst_13 : f32 to vector<8x64xf32>
    %18 = arith.maximumf %16, %17 : vector<8x64xf32>
    %19 = arith.truncf %18 : vector<8x64xf32> to vector<8x64xbf16>
    %c1 = arith.constant 1 : index
    %c0_14 = arith.constant 0 : index
    %c0_15 = arith.constant 0 : index
    %20 = vector.load %arg4[%c1, %c0_14, %c0_15] : memref<3x64x64xbf16, #tpu.memory_space<vmem>>, vector<1x64x64xbf16>
    %21 = vector.shape_cast %20 : vector<1x64x64xbf16> to vector<64x64xbf16>
    %cst_16 = arith.constant dense<0.000000e+00> : vector<8x64xf32>
    %22 = tpu.matmul %19, %21, %cst_16 {dimension_numbers = #tpu.dot_dimension_numbers<[1], [0], [0], [1], [0, 0, 1, 1], [], []>} : vector<8x64xbf16>, vector<64x64xbf16>, vector<8x64xf32> -> vector<8x64xf32>
    %c1_17 = arith.constant 1 : index
    %c0_18 = arith.constant 0 : index
    %c0_19 = arith.constant 0 : index
    %23 = vector.load %arg5[%c1_17, %c0_18, %c0_19] : memref<3x1x64xf32, #tpu.memory_space<vmem>>, vector<1x1x64xf32>
    %24 = vector.shape_cast %23 : vector<1x1x64xf32> to vector<1x64xf32>
    %25 = vector.broadcast %24 : vector<1x64xf32> to vector<8x64xf32>
    %26 = arith.addf %22, %25 : vector<8x64xf32>
    %cst_20 = arith.constant 0.000000e+00 : f32
    %27 = vector.broadcast %cst_20 : f32 to vector<8x64xf32>
    %28 = arith.maximumf %26, %27 : vector<8x64xf32>
    %29 = arith.truncf %28 : vector<8x64xf32> to vector<8x64xbf16>
    %c2 = arith.constant 2 : index
    %c0_21 = arith.constant 0 : index
    %c0_22 = arith.constant 0 : index
    %30 = vector.load %arg4[%c2, %c0_21, %c0_22] : memref<3x64x64xbf16, #tpu.memory_space<vmem>>, vector<1x64x64xbf16>
    %31 = vector.shape_cast %30 : vector<1x64x64xbf16> to vector<64x64xbf16>
    %cst_23 = arith.constant dense<0.000000e+00> : vector<8x64xf32>
    %32 = tpu.matmul %29, %31, %cst_23 {dimension_numbers = #tpu.dot_dimension_numbers<[1], [0], [0], [1], [0, 0, 1, 1], [], []>} : vector<8x64xbf16>, vector<64x64xbf16>, vector<8x64xf32> -> vector<8x64xf32>
    %c2_24 = arith.constant 2 : index
    %c0_25 = arith.constant 0 : index
    %c0_26 = arith.constant 0 : index
    %33 = vector.load %arg5[%c2_24, %c0_25, %c0_26] : memref<3x1x64xf32, #tpu.memory_space<vmem>>, vector<1x1x64xf32>
    %34 = vector.shape_cast %33 : vector<1x1x64xf32> to vector<1x64xf32>
    %35 = vector.broadcast %34 : vector<1x64xf32> to vector<8x64xf32>
    %36 = arith.addf %32, %35 : vector<8x64xf32>
    %cst_27 = arith.constant 0.000000e+00 : f32
    %37 = vector.broadcast %cst_27 : f32 to vector<8x64xf32>
    %38 = arith.maximumf %36, %37 : vector<8x64xf32>
    %39 = arith.truncf %38 : vector<8x64xf32> to vector<8x64xbf16>
    %c0_28 = arith.constant 0 : index
    %c0_29 = arith.constant 0 : index
    %40 = vector.load %arg6[%c0_28, %c0_29] : memref<64x128xbf16, #tpu.memory_space<vmem>>, vector<64x128xbf16>
    %cst_30 = arith.constant dense<0.000000e+00> : vector<8x128xf32>
    %41 = tpu.matmul %39, %40, %cst_30 {dimension_numbers = #tpu.dot_dimension_numbers<[1], [0], [0], [1], [0, 0, 1, 1], [], []>} : vector<8x64xbf16>, vector<64x128xbf16>, vector<8x128xf32> -> vector<8x128xf32>
    %c0_31 = arith.constant 0 : index
    %c0_32 = arith.constant 0 : index
    %42 = vector.load %arg7[%c0_31, %c0_32] : memref<1x128xf32, #tpu.memory_space<vmem>>, vector<1x128xf32>
    %43 = vector.broadcast %42 : vector<1x128xf32> to vector<8x128xf32>
    %44 = arith.addf %41, %43 : vector<8x128xf32>
    %45 = arith.truncf %44 : vector<8x128xf32> to vector<8x128xbf16>
    %c0_33 = arith.constant 0 : index
    %c0_34 = arith.constant 0 : index
    %46 = vector.load %arg8[%c0_33, %c0_34] : memref<8x128xbf16, #tpu.memory_space<vmem>>, vector<8x128xbf16>
    tpu.vector_store %arg8[%c0_33, %c0_34], %45 {strides = array<i32>} : memref<8x128xbf16, #tpu.memory_space<vmem>>, vector<8x128xbf16>,
    return
  }
  func.func @transform_0(%arg0: i32) -> (i32, i32) {
    %c0_i32 = arith.constant 0 : i32
    %c0_i32_0 = arith.constant 0 : i32
    return %arg0, %c0_i32 : i32, i32
  }
  func.func @transform_1(%arg0: i32) -> (i32, i32) {
    %c0_i32 = arith.constant 0 : i32
    %c0_i32_0 = arith.constant 0 : i32
    %c0_i32_1 = arith.constant 0 : i32
    return %c0_i32, %c0_i32_0 : i32, i32
  }
  func.func @transform_2(%arg0: i32) -> (i32, i32) {
    %c0_i32 = arith.constant 0 : i32
    %c0_i32_0 = arith.constant 0 : i32
    %c0_i32_1 = arith.constant 0 : i32
    return %c0_i32, %c0_i32_0 : i32, i32
  }
  func.func @transform_3(%arg0: i32) -> (i32, i32, i32) {
    %c0_i32 = arith.constant 0 : i32
    %c0_i32_0 = arith.constant 0 : i32
    %c0_i32_1 = arith.constant 0 : i32
    %c0_i32_2 = arith.constant 0 : i32
    return %c0_i32, %c0_i32_0, %c0_i32_1 : i32, i32, i32
  }
  func.func @transform_4(%arg0: i32) -> (i32, i32, i32) {
    %c0_i32 = arith.constant 0 : i32
    %c0_i32_0 = arith.constant 0 : i32
    %c0_i32_1 = arith.constant 0 : i32
    %c0_i32_2 = arith.constant 0 : i32
    return %c0_i32, %c0_i32_0, %c0_i32_1 : i32, i32, i32
  }
  func.func @transform_5(%arg0: i32) -> (i32, i32) {
    %c0_i32 = arith.constant 0 : i32
    %c0_i32_0 = arith.constant 0 : i32
    %c0_i32_1 = arith.constant 0 : i32
    return %c0_i32, %c0_i32_0 : i32, i32
  }
  func.func @transform_6(%arg0: i32) -> (i32, i32) {
    %c0_i32 = arith.constant 0 : i32
    %c0_i32_0 = arith.constant 0 : i32
    %c0_i32_1 = arith.constant 0 : i32
    return %c0_i32, %c0_i32_0 : i32, i32
  }
  func.func @transform_7(%arg0: i32) -> (i32, i32) {
    %c0_i32 = arith.constant 0 : i32
    %c0_i32_0 = arith.constant 0 : i32
    return %arg0, %c0_i32 : i32, i32
  }
}

</mosaic_0001>

<bundles_post_ra>
// kernel: tpu_custom_call.1
= control target key start
LH: loop header
LB: loop body
LE: loop exit
PB: predicated region body
PF: predicated region fallthrough
CT: control target
= control target key end

     0   :  { %12 = vsyncpa [#allocation3], 0  ;;  %s844_s0 = inlined_call_operand.hbm [shape: f32[8,8], index: 0, kind: input, shape index: {}]   ;;  %s845_s1 = inlined_call_operand.hbm [shape: bf16[8,64], index: 1, kind: input, shape index: {}]   ;;  %s846_s2 = inlined_call_operand.vmem [shape: f32[1,64], index: 2, kind: input, shape index: {}]   ;;  %s847_s3 = inlined_call_operand.hbm [shape: bf16[3,64,64], index: 3, kind: input, shape index: {}]   ;;  %s848_s4 = inlined_call_operand.vmem [shape: f32[3,1,64], index: 4, kind: input, shape index: {}]   ;;  %s849_s5 = inlined_call_operand.hbm [shape: bf16[64,128], index: 5, kind: input, shape index: {}]   ;;  %s850_s6 = inlined_call_operand.vmem [shape: f32[1,128], index: 6, kind: input, shape index: {}]   ;;  %s851_s7 = inlined_call_operand.hbm [shape: bf16[8,128], index: 7, kind: output, shape index: {}]  }
   0x1   :  { %13 = vsyncpa [#allocation6], 0 }
   0x2   :  { %14 = vsyncpa [#allocation9], 0 }
   0x3   :  { %15 = vsyncpa [#allocation4], 0  ;;  %s734_s24 = smov [#allocation5]   ;;  %s735_s26 = smov [#allocation2]  }
   0x4   :  { %s32_s25 = sshll.u32 %s734_s24, 4  ;;  %s22_s27 = sshll.u32 %s735_s26, 4  ;;  %s33_s25 = int_to_ptr.vmem [resolvable:$true] %s32_s25  ;;  %s23_s27 = int_to_ptr.vmem [resolvable:$true] %s22_s27 }
   0x5   :  { %s634_s28 = scalar_lea.vmem %s33_s25, 64  ;;  %p639_p1 = scmp.lt.s32.totalorder %s33_s25, %s33_s25 }
   0x6   :  { %p635_p0 = scmp.ne.s32.totalorder %s33_s25, %s634_s28  ;;  %p640_p2 = scmp.lt.s32.totalorder %s634_s28, %s634_s28 }
   0x8   :  { %p641_p3 = por %p640_p2, %p639_p1 }
   0xa   :  { %p642_p4 = pnand %p641_p3, %p635_p0 }
   0xc   :  { %645 = shalt.err (!%p642_p4)
}
   0xd   :  { %35 = dma.hbm_to_vmem [thread:$0]  %s845_s1, 64, %s33_s25, [#allocation6]  }
   0xe   :  { %s654_s8 = scalar_lea.vmem %s23_s27, 128  ;;  %p659_p6 = scmp.lt.s32.totalorder %s23_s27, %s23_s27 }
   0xf   :  { %p655_p5 = scmp.ne.s32.totalorder %s23_s27, %s654_s8  ;;  %p660_p7 = scmp.lt.s32.totalorder %s654_s8, %s654_s8 }
  0x11   :  { %p661_p8 = por %p660_p7, %p659_p6 }
  0x13   :  { %p662_p9 = pnand %p661_p8, %p655_p5 }
  0x15   :  { %665 = shalt.err (!%p662_p9)
}
  0x16   :  { %25 = dma.hbm_to_vmem [thread:$0]  %s844_s0, 128, %s23_s27, [#allocation3]  }
  0x17   :  { %s736_s11 = smov [#allocation7]  }
  0x18   :  { %s43_s12 = sshll.u32 %s736_s11, 4  ;;  %s44_s12 = int_to_ptr.vmem [resolvable:$true] %s43_s12 }
  0x19   :  { %s674_s13 = scalar_lea.vmem %s44_s12, 1536  ;;  %p679_p11 = scmp.lt.s32.totalorder %s44_s12, %s44_s12 }
  0x1a   :  { %p675_p10 = scmp.ne.s32.totalorder %s44_s12, %s674_s13  ;;  %p680_p12 = scmp.lt.s32.totalorder %s674_s13, %s674_s13 }
  0x1c   :  { %p681_p13 = por %p680_p12, %p679_p11 }
  0x1e   :  { %p682_p0 = pnand %p681_p13, %p675_p10 }
  0x20   :  { %685 = shalt.err (!%p682_p0)
}
  0x21   :  { %s737_s1 = smov 64   ;;  %s738_s14 = smov 4  }
  0x22   :  { %49 = dma.hbm_to_vmem [thread:$0]  %s847_s3, 1536, %s44_s12, [#allocation6], %s737_s1, %s737_s1, %s738_s14  }
  0x23   :  { %s739_s17 = smov [#allocation8]  }
  0x24   :  { %s57_s18 = sshll.u32 %s739_s17, 4  ;;  %s58_s18 = int_to_ptr.vmem [resolvable:$true] %s57_s18 }
  0x25   :  { %s694_s0 = scalar_lea.vmem %s58_s18, 512  ;;  %p699_p2 = scmp.lt.s32.totalorder %s58_s18, %s58_s18 }
  0x26   :  { %p695_p1 = scmp.ne.s32.totalorder %s58_s18, %s694_s0  ;;  %p700_p3 = scmp.lt.s32.totalorder %s694_s0, %s694_s0 }
  0x28   :  { %p701_p4 = por %p700_p3, %p699_p2 }
  0x2a   :  { %p702_p5 = pnand %p701_p4, %p695_p1 }
  0x2c   :  { %705 = shalt.err (!%p702_p5)
}
  0x2d   :  { %63 = dma.hbm_to_vmem [thread:$0]  %s849_s5, 512, %s58_s18, [#allocation9], %s737_s1, %s737_s1, %s738_s14  }
  0x2e   :  { %726 = dma.done.wait [#allocation3], 128  }
  0x2f   :  { %727 = vsyncadd [#allocation3], 4294967168 }
  0x30   :  { %728 = dma.done.wait [#allocation6], 1600  }
  0x31   :  { %729 = vsyncadd [#allocation6], 4294965696 }
  0x32   :  { %730 = dma.done.wait [#allocation9], 512  }
  0x33   :  { %731 = vsyncadd [#allocation9], 4294966784  ;;  %v740_v0 = vmov 0.0   ;;  %vm741_vm0 = vmmov 0   ;;  %vm93_vm1 = vcmask 1043456   ;;  %v79_v2 = vld [vmem:[#allocation2] sm:$0xff] }
  0x34   :  { %547 = vmatprep.subr.bf16.mxu0 %v740_v0  ;;  %549 = vmatprep.mubr.msk.bf16.mxu0 %vm741_vm0, %v740_v0  ;;  %v81_v1 = vld [vmem:[#allocation5] sm:$0xf]  ;;  %v80_v4 = vpack.c.bf16 %v79_v2, %v79_v2  ;;  %vm89_vm2 = vcmask 64512   ;;  %v611_v6 = vld [vmem:[#allocation7 + $0x10] sm:$0xff]   ;;  %v612_v7 = vld [vmem:[#allocation7 + $0x8] sm:$0xff]   ;;  %vm178_vm3 = vcmask 523264  }
  0x35   :  { %553 = vmatprep.subr.bf16.mxu1 %v740_v0  ;;  %561 = vmatprep.mubr.msk.bf16.mxu1 %vm741_vm0, %v740_v0  ;;  %v95_v3 = vsel %vm93_vm1, %v81_v1, 0  ;;  %v610_v5 = vld [vmem:[#allocation7 + $0x18] sm:$0xff]   ;;  %v613_v8 = vld [vmem:[#allocation7] sm:$0xff]   ;;  %v615_v10 = vld [vmem:[#allocation7 + $0x30] sm:$0xff]   ;;  %s742_s28 = smov [#allocation10]  }
  0x36   :  { %548 = vmatpush3.bf16.msra.mxu0 %v95_v3  ;;  %554 = vmatpush3.bf16.msra.mxu1 %v610_v5  ;;  %v614_v9 = vld [vmem:[#allocation7 + $0x38] sm:$0xff]   ;;  %v497_v11 = vld [vmem:[%s846_s2] ss:$0 sm:$0xff]  ;;  %v616_v19 = vld [vmem:[#allocation7 + $0x28] sm:$0xff]   ;;  %s486_s29 = sshll.u32 %s742_s28, 4  ;;  %s487_s29 = int_to_ptr.vmem [resolvable:$true] %s486_s29 }
  0x37   :  { %565 = vmatprep.subr.bf16.mxu0 %v740_v0  ;;  %555 = vmatprep.subr.bf16.mxu1 %v740_v0  ;;  %v617_v20 = vld [vmem:[#allocation7 + $0x20] sm:$0xff]   ;;  %v618_v21 = vld [vmem:[#allocation7 + $0x58] sm:$0xff]   ;;  %v619_v22 = vld [vmem:[#allocation7 + $0x50] sm:$0xff]   ;;  %p711_p7 = scmp.lt.s32.totalorder %s487_s29, %s487_s29 }
  0x38   :  { %v499_v23 = vld [vmem:[%s848_s4] ss:$0 sm:$0xff]  ;;  %v620_v31 = vld [vmem:[#allocation7 + $0x48] sm:$0xff]   ;;  %v621_v32 = vld [vmem:[#allocation7 + $0x40] sm:$0xff]  }
  0x39   :  { %550 = vmatmul.mubr.msk.bf16.vlgmr.msra.gmra.mxu0 %vm89_vm2, %v80_v4  ;;  %v622_v33 = vld [vmem:[#allocation8 + $0x18] sm:$0xff]   ;;  %v623_v34 = vld [vmem:[#allocation8 + $0x10] sm:$0xff]   ;;  %v624_v43 = vld [vmem:[#allocation8 + $0x8] sm:$0xff]  }
  0x3a   :  { %573 = vmatprep.mubr.msk.bf16.mxu0 %vm741_vm0, %v740_v0  ;;  %556 = vmatpush3.bf16.msra.mxu1 %v611_v6  ;;  %v506_v35 = vld [vmem:[%s848_s4 + $0x1] ss:$0 sm:$0xff]  ;;  %v625_v44 = vld [vmem:[#allocation8] sm:$0xff]   ;;  %v513_v45 = vld [vmem:[%s848_s4 + $0x2] ss:$0 sm:$0xff]  ;;  %s706_s4 = scalar_lea.vmem %s487_s29, 64 }
  0x3b   :  { %557 = vmatprep.subr.bf16.mxu1 %v740_v0  ;;  %566 = vmatpush3.bf16.msra.mxu0 %v614_v9  ;;  %v519_v53 = vld [vmem:[%s850_s6] ss:$0 sm:$0xff]  ;;  %p707_p6 = scmp.ne.s32.totalorder %s487_s29, %s706_s4  ;;  %p712_p8 = scmp.lt.s32.totalorder %s706_s4, %s706_s4 }
  0x3c   :  { %567 = vmatprep.subr.bf16.mxu0 %v740_v0 }
  0x3d   :  { %p713_p9 = por %p712_p8, %p711_p7 }
  0x3e   :  { %558 = vmatpush3.bf16.msra.mxu1 %v612_v7 }
  0x3f   :  { %559 = vmatprep.subr.bf16.mxu1 %v740_v0  ;;  %568 = vmatpush3.bf16.msra.mxu0 %v615_v10  ;;  %p714_p10 = pnand %p713_p9, %p707_p6 }
  0x40   :  { %569 = vmatprep.subr.bf16.mxu0 %v740_v0 }
  0x42   :  { %560 = vmatpush3.bf16.msra.mxu1 %v613_v8 }
  0x43   :  { %577 = vmatprep.subr.bf16.mxu1 %v740_v0  ;;  %570 = vmatpush3.bf16.msra.mxu0 %v616_v19 }
  0x44   :  { %571 = vmatprep.subr.bf16.mxu0 %v740_v0 }
  0x47   :  { %572 = vmatpush3.bf16.msra.mxu0 %v617_v20 }
  0x48   :  { %589 = vmatprep.subr.bf16.mxu0 %v740_v0 }
  0xf9   :  { %v131_v12 = vpop.f32.mrf.mxu0 }
  0xfa   :  { %v132_v13 = vadd.f32 %v497_v11, %v131_v12 }
  0xfb   :  { %v551_v14 = vpop.f32.mrf.mxu0 }
  0xfc   :  { %v137_v15 = vmax.f32 %v132_v13, 0.0 }
  0xfd   :  { %v134_v16 = vpop.f32.mrf.mxu0 }
  0xfe   :  { %v138_v17 = vpack.c.bf16 %v137_v15, %v137_v15 }
  0xff   :  { %v552_v18 = vpop.f32.mrf.mxu0 }
 0x100   :  { %562 = vmatmul.mubr.msk.bf16.vlgmr.msra.gmra.mxu1 %vm178_vm3, %v138_v17 }
 0x101   :  { %585 = vmatprep.mubr.msk.bf16.mxu1 %vm741_vm0, %v740_v0  ;;  %578 = vmatpush3.bf16.msra.mxu1 %v618_v21 }
 0x102   :  { %579 = vmatprep.subr.bf16.mxu1 %v740_v0 }
 0x105   :  { %580 = vmatpush3.bf16.msra.mxu1 %v619_v22 }
 0x106   :  { %581 = vmatprep.subr.bf16.mxu1 %v740_v0 }
 0x109   :  { %582 = vmatpush3.bf16.msra.mxu1 %v620_v31 }
 0x10a   :  { %583 = vmatprep.subr.bf16.mxu1 %v740_v0 }
 0x10d   :  { %584 = vmatpush3.bf16.msra.mxu1 %v621_v32 }
 0x1c0   :  { %v216_v24 = vpop.f32.mrf.mxu1 }
 0x1c1   :  { %v217_v25 = vadd.f32 %v499_v23, %v216_v24 }
 0x1c2   :  { %v563_v26 = vpop.f32.mrf.mxu1 }
 0x1c3   :  { %v222_v27 = vmax.f32 %v217_v25, 0.0 }
 0x1c4   :  { %v219_v28 = vpop.f32.mrf.mxu1 }
 0x1c5   :  { %v223_v29 = vpack.c.bf16 %v222_v27, %v222_v27 }
 0x1c6   :  { %v564_v30 = vpop.f32.mrf.mxu1 }
 0x1c7   :  { %574 = vmatmul.mubr.msk.bf16.vlgmr.msra.gmra.mxu0 %vm178_vm3, %v223_v29 }
 0x1c8   :  { %597 = vmatprep.mubr.msk.bf16.mxu0 %vm741_vm0, %v740_v0  ;;  %590 = vmatpush3.bf16.msra.mxu0 %v622_v33 }
 0x1c9   :  { %591 = vmatprep.subr.bf16.mxu0 %v740_v0 }
 0x1cc   :  { %592 = vmatpush3.bf16.msra.mxu0 %v623_v34 }
 0x1cd   :  { %593 = vmatprep.subr.bf16.mxu0 %v740_v0 }
 0x1d0   :  { %594 = vmatpush3.bf16.msra.mxu0 %v624_v43 }
 0x1d1   :  { %595 = vmatprep.subr.bf16.mxu0 %v740_v0 }
 0x1d4   :  { %596 = vmatpush3.bf16.msra.mxu0 %v625_v44 }
 0x287   :  { %v302_v36 = vpop.f32.mrf.mxu0 }
 0x288   :  { %v303_v37 = vadd.f32 %v506_v35, %v302_v36 }
 0x289   :  { %v575_v38 = vpop.f32.mrf.mxu0 }
 0x28a   :  { %v308_v39 = vmax.f32 %v303_v37, 0.0 }
 0x28b   :  { %v305_v40 = vpop.f32.mrf.mxu0 }
 0x28c   :  { %v309_v41 = vpack.c.bf16 %v308_v39, %v308_v39 }
 0x28d   :  { %v576_v42 = vpop.f32.mrf.mxu0 }
 0x28e   :  { %586 = vmatmul.mubr.msk.bf16.vlgmr.msra.gmra.mxu1 %vm178_vm3, %v309_v41 }
 0x34e   :  { %v388_v46 = vpop.f32.mrf.mxu1 }
 0x34f   :  { %v389_v47 = vadd.f32 %v513_v45, %v388_v46 }
 0x350   :  { %v587_v48 = vpop.f32.mrf.mxu1 }
 0x351   :  { %v394_v49 = vmax.f32 %v389_v47, 0.0 }
 0x352   :  { %v391_v50 = vpop.f32.mrf.mxu1 }
 0x353   :  { %v395_v51 = vpack.c.bf16 %v394_v49, %v394_v49 }
 0x354   :  { %v588_v52 = vpop.f32.mrf.mxu1 }
 0x355   :  { %598 = vmatmul.mubr.msk.bf16.vlgmr.msra.gmra.mxu0 %vm178_vm3, %v395_v51 }
 0x415   :  { %v472_v54 = vpop.f32.mrf.mxu0 }
 0x416   :  { %v473_v55 = vadd.f32 %v519_v53, %v472_v54 }
 0x417   :  { %v599_v56 = vpop.f32.mrf.mxu0 }
 0x418   :  { %v478_v57 = vpack.c.bf16 %v473_v55, %v473_v55 }
 0x419   :  { %v475_v58 = vpop.f32.mrf.mxu0 }
 0x41a   :  { %479 = vst [vmem:[#allocation10] sm:$0xf] %v478_v57 }
 0x41b   :  { %v600_v59 = vpop.f32.mrf.mxu0 }
 0x41c   :  { %717 = shalt.err (!%p714_p10)
}
 0x41d   :  { %489 = dma.vmem_to_hbm [thread:$0]  %s487_s29, 64, %s851_s7, [#allocation4]  }
 0x41e   :  { %732 = dma.done.wait [#allocation4], 64  }
 0x41f   :  { %733 = vsyncadd [#allocation4], 4294967232 }
 0x420   :  { %493 = vsyncpa [#allocation3], 1 }
 0x421   :  { %494 = vsyncpa [#allocation6], 1 }
 0x422   :  { %495 = vsyncpa [#allocation9], 1 }
 0x423   :  { %496 = vsyncpa [#allocation4], 1 }

</bundles_post_ra>
